<compile_context>
chip_gen: v7x
topology: tpu7x:2x2x1
jax: 0.10.0
libtpu: 0.0.40
codegen_flags: <defaults>
</compile_context>

<pallas_src>
import functools
import math

import jax
import jax.numpy as jnp
from jax import lax
from jax.experimental import pallas as pl
from jax.experimental.pallas import tpu as pltpu


# ---------------------------------------------------------------------------
# BlockSpec helper: full-array block resident in VMEM (grid = ()).
# ---------------------------------------------------------------------------
def _vmem_spec():
    return pl.BlockSpec(memory_space=pltpu.MemorySpace.VMEM)


# ---------------------------------------------------------------------------
# The single fused forward kernel.
# ---------------------------------------------------------------------------
def _stmmr_fused_kernel(
    # data ([x|i] packed, adjacency) -- bf16
    xi_ref, a_ref,
    # block-diagonal MGCN weights (bf16) and packed biases (f32)
    w13_ref, b13_ref, w24_ref, b24_ref,
    # block-diagonal MLP weights / bias
    wm_ref, bm_ref,
    # fc (consumes the packed [q_x|q_i] directly)
    fc_w_ref, fc_b_ref,
    # ZINB heads packed column-wise: [pi_w | disp_w | mean_w]
    zinb_w_ref, zinb_b_ref,
    # single lane-dense output slab: [z_I | q_x | q_i | pi | disp | mean]
    out_ref,
    *, h1, nfeatX,
):
    f32 = jnp.float32
    bf16 = jnp.bfloat16

    # ---- MGCN: both branches fused into ONE A @ [.|.] matmul per layer ----
    # layer 1: s1 = [x@W1 | i@W3] via block-diag weight, then A@s1, bias, relu
    s1 = jnp.dot(xi_ref[...], w13_ref[...], preferred_element_type=f32)
    h_relu = jnp.maximum(
        jnp.dot(a_ref[...], s1.astype(bf16), preferred_element_type=f32)
        + b13_ref[...], 0.0)                                       # [N, 2*h0]
    # layer 2: s2 = [h_x@W2 | h_i@W4] via block-diag weight, then A@s2 + bias
    s2 = jnp.dot(h_relu.astype(bf16), w24_ref[...], preferred_element_type=f32)
    emb = (jnp.dot(a_ref[...], s2.astype(bf16), preferred_element_type=f32)
           + b24_ref[...])                                         # [N, 2*h1]

    emb_x = emb[:, :h1]
    emb_i = emb[:, h1:]

    # ---- Self-attention (Q = K = V = emb); weights NOT written back -------
    # TODO(synk): training-mode nn.Dropout(0.1) on the attention weights is
    # omitted (eval-mode identity).
    def self_attn(e):
        d = e.shape[1]
        q = (e * (1.0 / math.sqrt(float(d)))).astype(bf16)  # fold scale into Q
        k = e.astype(bf16)
        scores = lax.dot_general(                            # Q K^T, no .T copy
            q, k, (((1,), (1,)), ((), ())), preferred_element_type=f32)
        m = jnp.max(scores, axis=-1, keepdims=True)
        ex = jnp.exp(scores - m)
        w = ex / jnp.sum(ex, axis=-1, keepdims=True)         # exact divide
        return jnp.dot(w.astype(bf16), k, preferred_element_type=f32)

    att_x = self_attn(emb_x)
    att_i = self_attn(emb_i)

    # ---- MLP: both branches in one block-diagonal matmul -> [q_x | q_i] ---
    qp = jnp.maximum(
        jnp.dot(emb.astype(bf16), wm_ref[...], preferred_element_type=f32)
        + bm_ref[...], 0.0)                                       # [N, 2*h1]

    # ---- fc over the packed [q_x | q_i] (== the torch concat) -------------
    z_xi = (jnp.dot(qp.astype(bf16), fc_w_ref[...], preferred_element_type=f32)
            + fc_b_ref[...])

    z_I = 20.0 * att_x + 1.0 * att_i + 10.0 * z_xi               # [N, h1] f32

    # ---- ZINB decoder: one packed matmul, band-limited activations --------
    zz = (jnp.dot(z_I.astype(bf16), zinb_w_ref[...], preferred_element_type=f32)
          + zinb_b_ref[...])                                     # [N, 3*nfeatX]
    pi = jax.nn.sigmoid(zz[:, :nfeatX])
    disp = jnp.clip(jax.nn.softplus(zz[:, nfeatX:2 * nfeatX]), 1e-4, 1e4)
    mean = jnp.clip(jnp.exp(zz[:, 2 * nfeatX:]), 1e-5, 1e6)

    # ---- single lane-dense output slab, band writes with static slices ----
    o0, o1, o2 = h1, 3 * h1, 3 * h1 + nfeatX
    out_ref[:, :o0] = z_I
    out_ref[:, o0:o1] = qp                 # q_x | q_i, no in-kernel concat
    out_ref[:, o1:o2] = pi
    out_ref[:, o2:o2 + nfeatX] = disp
    out_ref[:, o2 + nfeatX:] = mean


# ---------------------------------------------------------------------------
# One-time parameter packing: block-diagonal branch fusion, head concat, bf16.
# ---------------------------------------------------------------------------
def pack_params(params):
    bf16 = jnp.bfloat16

    def block_diag(wa, wb):
        fa, oa = wa.shape
        fb, ob = wb.shape
        top = jnp.concatenate([wa, jnp.zeros((fa, ob), wa.dtype)], axis=1)
        bot = jnp.concatenate([jnp.zeros((fb, oa), wb.dtype), wb], axis=1)
        return jnp.concatenate([top, bot], axis=0)

    return {
        "w13": block_diag(params["gc1_w"], params["gc3_w"]).astype(bf16),
        "b13": jnp.concatenate([params["gc1_b"], params["gc3_b"]]).reshape(1, -1),
        "w24": block_diag(params["gc2_w"], params["gc4_w"]).astype(bf16),
        "b24": jnp.concatenate([params["gc2_b"], params["gc4_b"]]).reshape(1, -1),
        "wm": block_diag(params["mlp_x_w"], params["mlp_i_w"]).astype(bf16),
        "bm": jnp.concatenate([params["mlp_x_b"], params["mlp_i_b"]]).reshape(1, -1),
        "fc_w": params["fc_w"].astype(bf16),
        "fc_b": params["fc_b"].reshape(1, -1),
        "zinb_w": jnp.concatenate(
            [params["pi_w"], params["disp_w"], params["mean_w"]], axis=1
        ).astype(bf16),
        "zinb_b": jnp.concatenate(
            [params["pi_b"], params["disp_b"], params["mean_b"]]).reshape(1, -1),
    }


# ---------------------------------------------------------------------------
# Wrapper: one fused pallas_call; splits the lane-dense output slab.
# ---------------------------------------------------------------------------
def stmmr_forward(packed, x, i, a):
    n, nfeatX = x.shape
    h1 = packed["fc_b"].shape[1]
    width = 3 * h1 + 3 * nfeatX

    xi = jnp.concatenate([x, i], axis=1).astype(jnp.bfloat16)
    a_bf = a.astype(jnp.bfloat16)

    args = (
        xi, a_bf,
        packed["w13"], packed["b13"], packed["w24"], packed["b24"],
        packed["wm"], packed["bm"],
        packed["fc_w"], packed["fc_b"],
        packed["zinb_w"], packed["zinb_b"],
    )

    # Size the scoped-VMEM limit from the actual working set (inputs + output
    # slab + the two [N,N] f32 score matrices), with headroom; clamp so it is
    # valid on every generation (v7x has only 64 MiB physical VMEM).
    work_bytes = (sum(t.size * t.dtype.itemsize for t in args)
                  + n * width * 4 + 2 * n * n * 4)
    vmem_limit = int(min(max(4 * work_bytes, 32 << 20), 64 << 20))

    out = pl.pallas_call(
        functools.partial(_stmmr_fused_kernel, h1=h1, nfeatX=nfeatX),
        out_shape=jax.ShapeDtypeStruct((n, width), jnp.float32),
        in_specs=[_vmem_spec() for _ in args],
        out_specs=_vmem_spec(),
        compiler_params=pltpu.CompilerParams(vmem_limit_bytes=vmem_limit),
    )(*args)

    z_I = out[:, :h1]
    q_x = out[:, h1:2 * h1]
    q_i = out[:, 2 * h1:3 * h1]
    pi = out[:, 3 * h1:3 * h1 + nfeatX]
    disp = out[:, 3 * h1 + nfeatX:3 * h1 + 2 * nfeatX]
    mean = out[:, 3 * h1 + 2 * nfeatX:]
    return z_I, q_x, q_i, pi, disp, mean


# ---------------------------------------------------------------------------
# Pure-JAX f32 reference (for correctness check against the fused kernel).
# ---------------------------------------------------------------------------
def stmmr_reference(params, x, i, a):
    def gcn(h, w, b, relu):
        out = a @ (h @ w) + b
        return jnp.maximum(out, 0.0) if relu else out

    emb_x = gcn(gcn(x, params["gc1_w"], params["gc1_b"], True),
                params["gc2_w"], params["gc2_b"], False)
    emb_i = gcn(gcn(i, params["gc3_w"], params["gc3_b"], True),
                params["gc4_w"], params["gc4_b"], False)

    def attn(e):
        d = e.shape[1]
        s = (e @ e.T) / math.sqrt(float(d))
        return jax.nn.softmax(s, axis=-1) @ e

    att_x, att_i = attn(emb_x), attn(emb_i)
    q_x = jnp.maximum(emb_x @ params["mlp_x_w"] + params["mlp_x_b"], 0.0)
    q_i = jnp.maximum(emb_i @ params["mlp_i_w"] + params["mlp_i_b"], 0.0)
    z_xi = jnp.concatenate([q_x, q_i], axis=1) @ params["fc_w"] + params["fc_b"]
    z_I = 20.0 * att_x + 1.0 * att_i + 10.0 * z_xi
    pi = jax.nn.sigmoid(z_I @ params["pi_w"] + params["pi_b"])
    disp = jnp.clip(jax.nn.softplus(z_I @ params["disp_w"] + params["disp_b"]),
                    1e-4, 1e4)
    mean = jnp.clip(jnp.exp(z_I @ params["mean_w"] + params["mean_b"]),
                    1e-5, 1e6)
    return z_I, q_x, q_i, pi, disp, mean


# ---------------------------------------------------------------------------
# Parameters (deterministic, synthetic init).
# ---------------------------------------------------------------------------
def init_params(key, nfeatX, nfeatI, hidden_dims):
    h0, h1 = hidden_dims

    def dense(key, fin, fout):
        kw, kb = jax.random.split(key)
        lim = 1.0 / math.sqrt(float(fin))
        w = jax.random.uniform(kw, (fin, fout), jnp.float32, -lim, lim)
        b = jax.random.uniform(kb, (fout,), jnp.float32, -lim, lim)
        return w, b

    shapes = {
        "gc1": (nfeatX, h0), "gc2": (h0, h1),
        "gc3": (nfeatI, h0), "gc4": (h0, h1),
        "mlp_x": (h1, h1), "mlp_i": (h1, h1),
        "fc": (2 * h1, h1),
        "pi": (h1, nfeatX), "disp": (h1, nfeatX), "mean": (h1, nfeatX),
    }
    params = {}
    keys = jax.random.split(key, len(shapes))
    for k, name in zip(keys, shapes):
        w, b = dense(k, *shapes[name])
        params[name + "_w"] = w
        params[name + "_b"] = b
    return params


# ---------------------------------------------------------------------------
# Demo / smoke test.
# ---------------------------------------------------------------------------
if __name__ == "__main__":
    N = 16                       # number of spots
    nfeatX, nfeatI = 48, 24      # gene-expression / image feature dims
    hidden_dims = (32, 16)

    key = jax.random.PRNGKey(0)
    kx, ki, ka, kp = jax.random.split(key, 4)

    x = jax.random.normal(kx, (N, nfeatX), jnp.float32)
    i = jax.random.normal(ki, (N, nfeatI), jnp.float32)

    # symmetric, row-normalized adjacency (with self-loops)
    raw = jax.random.uniform(ka, (N, N), jnp.float32)
    adj = (raw + raw.T) * 0.5 + jnp.eye(N, dtype=jnp.float32)
    a = adj / jnp.sum(adj, axis=1, keepdims=True)

    params = init_params(kp, nfeatX, nfeatI, hidden_dims)
    packed = pack_params(params)          # one-time weight packing (not per call)

    fwd = jax.jit(stmmr_forward)
    outs = jax.block_until_ready(fwd(packed, x, i, a))
    z_I, q_x, q_i, pi, disp, mean = outs

    # shape / finiteness checks
    h1 = hidden_dims[1]
    assert z_I.shape == (N, h1)
    assert q_x.shape == (N, h1) and q_i.shape == (N, h1)
    assert pi.shape == (N, nfeatX) and disp.shape == (N, nfeatX) and mean.shape == (N, nfeatX)
    for t in outs:
        assert bool(jnp.all(jnp.isfinite(t)))

    # numerical check vs. pure-JAX f32 reference (bf16 MXU operands -> loose tol)
    rz, rqx, rqi, rpi, rdisp, rmean = stmmr_reference(params, x, i, a)
    assert bool(jnp.allclose(z_I, rz, rtol=1e-1, atol=1e-1))
    assert bool(jnp.allclose(q_x, rqx, rtol=1e-1, atol=1e-1))
    assert bool(jnp.allclose(q_i, rqi, rtol=1e-1, atol=1e-1))
    assert bool(jnp.allclose(pi, rpi, rtol=1e-1, atol=1e-1))
    assert bool(jnp.allclose(disp, rdisp, rtol=1e-1, atol=1e-1))
    assert bool(jnp.all(mean > 0.0))      # exp head checked for positivity/finiteness

    print("KERNEL_OK")
</pallas_src>

<mosaic_0001>
module attributes {stable_mosaic.version = 11 : i64} {
  func.func @_stmmr_fused_kernel(%arg0: memref<16x72xbf16, #tpu.memory_space<vmem>>, %arg1: memref<16x16xbf16, #tpu.memory_space<vmem>>, %arg2: memref<72x64xbf16, #tpu.memory_space<vmem>>, %arg3: memref<1x64xf32, #tpu.memory_space<vmem>>, %arg4: memref<64x32xbf16, #tpu.memory_space<vmem>>, %arg5: memref<1x32xf32, #tpu.memory_space<vmem>>, %arg6: memref<32x32xbf16, #tpu.memory_space<vmem>>, %arg7: memref<1x32xf32, #tpu.memory_space<vmem>>, %arg8: memref<32x16xbf16, #tpu.memory_space<vmem>>, %arg9: memref<1x16xf32, #tpu.memory_space<vmem>>, %arg10: memref<16x144xbf16, #tpu.memory_space<vmem>>, %arg11: memref<1x144xf32, #tpu.memory_space<vmem>>, %arg12: memref<16x192xf32, #tpu.memory_space<vmem>>) attributes {dimension_semantics = [], scalar_prefetch = 0 : i64, scratch_operands = 0 : i64, tpu.core_type = #tpu.core_type<tc>} {
    %c0 = arith.constant 0 : index
    %c0_0 = arith.constant 0 : index
    %0 = vector.load %arg0[%c0, %c0_0] : memref<16x72xbf16, #tpu.memory_space<vmem>>, vector<16x72xbf16>
    %c0_1 = arith.constant 0 : index
    %c0_2 = arith.constant 0 : index
    %1 = vector.load %arg2[%c0_1, %c0_2] : memref<72x64xbf16, #tpu.memory_space<vmem>>, vector<72x64xbf16>
    %cst = arith.constant dense<0.000000e+00> : vector<16x64xf32>
    %2 = tpu.matmul %0, %1, %cst {dimension_numbers = #tpu.dot_dimension_numbers<[1], [0], [0], [1], [0, 0, 1, 1], [], []>} : vector<16x72xbf16>, vector<72x64xbf16>, vector<16x64xf32> -> vector<16x64xf32>
    %c0_3 = arith.constant 0 : index
    %c0_4 = arith.constant 0 : index
    %3 = vector.load %arg1[%c0_3, %c0_4] : memref<16x16xbf16, #tpu.memory_space<vmem>>, vector<16x16xbf16>
    %4 = arith.truncf %2 : vector<16x64xf32> to vector<16x64xbf16>
    %cst_5 = arith.constant dense<0.000000e+00> : vector<16x64xf32>
    %5 = tpu.matmul %3, %4, %cst_5 {dimension_numbers = #tpu.dot_dimension_numbers<[1], [0], [0], [1], [0, 0, 1, 1], [], []>} : vector<16x16xbf16>, vector<16x64xbf16>, vector<16x64xf32> -> vector<16x64xf32>
    %c0_6 = arith.constant 0 : index
    %c0_7 = arith.constant 0 : index
    %6 = vector.load %arg3[%c0_6, %c0_7] : memref<1x64xf32, #tpu.memory_space<vmem>>, vector<1x64xf32>
    %7 = vector.broadcast %6 : vector<1x64xf32> to vector<16x64xf32>
    %8 = arith.addf %5, %7 : vector<16x64xf32>
    %cst_8 = arith.constant 0.000000e+00 : f32
    %9 = vector.broadcast %cst_8 : f32 to vector<16x64xf32>
    %10 = arith.maximumf %8, %9 : vector<16x64xf32>
    %11 = arith.truncf %10 : vector<16x64xf32> to vector<16x64xbf16>
    %c0_9 = arith.constant 0 : index
    %c0_10 = arith.constant 0 : index
    %12 = vector.load %arg4[%c0_9, %c0_10] : memref<64x32xbf16, #tpu.memory_space<vmem>>, vector<64x32xbf16>
    %cst_11 = arith.constant dense<0.000000e+00> : vector<16x32xf32>
    %13 = tpu.matmul %11, %12, %cst_11 {dimension_numbers = #tpu.dot_dimension_numbers<[1], [0], [0], [1], [0, 0, 1, 1], [], []>} : vector<16x64xbf16>, vector<64x32xbf16>, vector<16x32xf32> -> vector<16x32xf32>
    %c0_12 = arith.constant 0 : index
    %c0_13 = arith.constant 0 : index
    %14 = vector.load %arg1[%c0_12, %c0_13] : memref<16x16xbf16, #tpu.memory_space<vmem>>, vector<16x16xbf16>
    %15 = arith.truncf %13 : vector<16x32xf32> to vector<16x32xbf16>
    %cst_14 = arith.constant dense<0.000000e+00> : vector<16x32xf32>
    %16 = tpu.matmul %14, %15, %cst_14 {dimension_numbers = #tpu.dot_dimension_numbers<[1], [0], [0], [1], [0, 0, 1, 1], [], []>} : vector<16x16xbf16>, vector<16x32xbf16>, vector<16x32xf32> -> vector<16x32xf32>
    %c0_15 = arith.constant 0 : index
    %c0_16 = arith.constant 0 : index
    %17 = vector.load %arg5[%c0_15, %c0_16] : memref<1x32xf32, #tpu.memory_space<vmem>>, vector<1x32xf32>
    %18 = vector.broadcast %17 : vector<1x32xf32> to vector<16x32xf32>
    %19 = arith.addf %16, %18 : vector<16x32xf32>
    %20 = vector.extract_strided_slice %19 {offsets = [0, 0], sizes = [16, 16], strides = [1, 1]} : vector<16x32xf32> to vector<16x16xf32>
    %21 = vector.extract_strided_slice %19 {offsets = [0, 16], sizes = [16, 16], strides = [1, 1]} : vector<16x32xf32> to vector<16x16xf32>
    %cst_17 = arith.constant 2.500000e-01 : f32
    %22 = vector.broadcast %cst_17 : f32 to vector<16x16xf32>
    %23 = arith.mulf %20, %22 : vector<16x16xf32>
    %24 = arith.truncf %23 : vector<16x16xf32> to vector<16x16xbf16>
    %25 = arith.truncf %20 : vector<16x16xf32> to vector<16x16xbf16>
    %cst_18 = arith.constant dense<0.000000e+00> : vector<16x16xf32>
    %26 = tpu.matmul %24, %25, %cst_18 {dimension_numbers = #tpu.dot_dimension_numbers<[1], [1], [0], [0], [0, 0, 1, 0], [], []>} : vector<16x16xbf16>, vector<16x16xbf16>, vector<16x16xf32> -> vector<16x16xf32>
    %cst_19 = arith.constant dense<0xFF800000> : vector<16xf32>
    %27 = vector.multi_reduction <maximumf>, %26, %cst_19 [1] : vector<16x16xf32> to vector<16xf32>
    %28 = vector.shape_cast %27 : vector<16xf32> to vector<16x1xf32>
    %29 = vector.broadcast %28 : vector<16x1xf32> to vector<16x16xf32>
    %30 = arith.subf %26, %29 : vector<16x16xf32>
    %31 = math.exp %30 : vector<16x16xf32>
    %cst_20 = arith.constant dense<0.000000e+00> : vector<16xf32>
    %32 = vector.multi_reduction <add>, %31, %cst_20 [1] : vector<16x16xf32> to vector<16xf32>
    %33 = vector.shape_cast %32 : vector<16xf32> to vector<16x1xf32>
    %34 = vector.broadcast %33 : vector<16x1xf32> to vector<16x16xf32>
    %35 = arith.divf %31, %34 : vector<16x16xf32>
    %36 = arith.truncf %35 : vector<16x16xf32> to vector<16x16xbf16>
    %cst_21 = arith.constant dense<0.000000e+00> : vector<16x16xf32>
    %37 = tpu.matmul %36, %25, %cst_21 {dimension_numbers = #tpu.dot_dimension_numbers<[1], [0], [0], [1], [0, 0, 1, 1], [], []>} : vector<16x16xbf16>, vector<16x16xbf16>, vector<16x16xf32> -> vector<16x16xf32>
    %cst_22 = arith.constant 2.500000e-01 : f32
    %38 = vector.broadcast %cst_22 : f32 to vector<16x16xf32>
    %39 = arith.mulf %21, %38 : vector<16x16xf32>
    %40 = arith.truncf %39 : vector<16x16xf32> to vector<16x16xbf16>
    %41 = arith.truncf %21 : vector<16x16xf32> to vector<16x16xbf16>
    %cst_23 = arith.constant dense<0.000000e+00> : vector<16x16xf32>
    %42 = tpu.matmul %40, %41, %cst_23 {dimension_numbers = #tpu.dot_dimension_numbers<[1], [1], [0], [0], [0, 0, 1, 0], [], []>} : vector<16x16xbf16>, vector<16x16xbf16>, vector<16x16xf32> -> vector<16x16xf32>
    %cst_24 = arith.constant dense<0xFF800000> : vector<16xf32>
    %43 = vector.multi_reduction <maximumf>, %42, %cst_24 [1] : vector<16x16xf32> to vector<16xf32>
    %44 = vector.shape_cast %43 : vector<16xf32> to vector<16x1xf32>
    %45 = vector.broadcast %44 : vector<16x1xf32> to vector<16x16xf32>
    %46 = arith.subf %42, %45 : vector<16x16xf32>
    %47 = math.exp %46 : vector<16x16xf32>
    %cst_25 = arith.constant dense<0.000000e+00> : vector<16xf32>
    %48 = vector.multi_reduction <add>, %47, %cst_25 [1] : vector<16x16xf32> to vector<16xf32>
    %49 = vector.shape_cast %48 : vector<16xf32> to vector<16x1xf32>
    %50 = vector.broadcast %49 : vector<16x1xf32> to vector<16x16xf32>
    %51 = arith.divf %47, %50 : vector<16x16xf32>
    %52 = arith.truncf %51 : vector<16x16xf32> to vector<16x16xbf16>
    %cst_26 = arith.constant dense<0.000000e+00> : vector<16x16xf32>
    %53 = tpu.matmul %52, %41, %cst_26 {dimension_numbers = #tpu.dot_dimension_numbers<[1], [0], [0], [1], [0, 0, 1, 1], [], []>} : vector<16x16xbf16>, vector<16x16xbf16>, vector<16x16xf32> -> vector<16x16xf32>
    %54 = arith.truncf %19 : vector<16x32xf32> to vector<16x32xbf16>
    %c0_27 = arith.constant 0 : index
    %c0_28 = arith.constant 0 : index
    %55 = vector.load %arg6[%c0_27, %c0_28] : memref<32x32xbf16, #tpu.memory_space<vmem>>, vector<32x32xbf16>
    %cst_29 = arith.constant dense<0.000000e+00> : vector<16x32xf32>
    %56 = tpu.matmul %54, %55, %cst_29 {dimension_numbers = #tpu.dot_dimension_numbers<[1], [0], [0], [1], [0, 0, 1, 1], [], []>} : vector<16x32xbf16>, vector<32x32xbf16>, vector<16x32xf32> -> vector<16x32xf32>
    %c0_30 = arith.constant 0 : index
    %c0_31 = arith.constant 0 : index
    %57 = vector.load %arg7[%c0_30, %c0_31] : memref<1x32xf32, #tpu.memory_space<vmem>>, vector<1x32xf32>
    %58 = vector.broadcast %57 : vector<1x32xf32> to vector<16x32xf32>
    %59 = arith.addf %56, %58 : vector<16x32xf32>
    %cst_32 = arith.constant 0.000000e+00 : f32
    %60 = vector.broadcast %cst_32 : f32 to vector<16x32xf32>
    %61 = arith.maximumf %59, %60 : vector<16x32xf32>
    %62 = arith.truncf %61 : vector<16x32xf32> to vector<16x32xbf16>
    %c0_33 = arith.constant 0 : index
    %c0_34 = arith.constant 0 : index
    %63 = vector.load %arg8[%c0_33, %c0_34] : memref<32x16xbf16, #tpu.memory_space<vmem>>, vector<32x16xbf16>
    %cst_35 = arith.constant dense<0.000000e+00> : vector<16x16xf32>
    %64 = tpu.matmul %62, %63, %cst_35 {dimension_numbers = #tpu.dot_dimension_numbers<[1], [0], [0], [1], [0, 0, 1, 1], [], []>} : vector<16x32xbf16>, vector<32x16xbf16>, vector<16x16xf32> -> vector<16x16xf32>
    %c0_36 = arith.constant 0 : index
    %c0_37 = arith.constant 0 : index
    %65 = vector.load %arg9[%c0_36, %c0_37] : memref<1x16xf32, #tpu.memory_space<vmem>>, vector<1x16xf32>
    %66 = vector.broadcast %65 : vector<1x16xf32> to vector<16x16xf32>
    %67 = arith.addf %64, %66 : vector<16x16xf32>
    %cst_38 = arith.constant 2.000000e+01 : f32
    %68 = vector.broadcast %cst_38 : f32 to vector<16x16xf32>
    %69 = arith.mulf %68, %37 : vector<16x16xf32>
    %cst_39 = arith.constant 1.000000e+00 : f32
    %70 = vector.broadcast %cst_39 : f32 to vector<16x16xf32>
    %71 = arith.mulf %70, %53 : vector<16x16xf32>
    %72 = arith.addf %69, %71 : vector<16x16xf32>
    %cst_40 = arith.constant 1.000000e+01 : f32
    %73 = vector.broadcast %cst_40 : f32 to vector<16x16xf32>
    %74 = arith.mulf %73, %67 : vector<16x16xf32>
    %75 = arith.addf %72, %74 : vector<16x16xf32>
    %76 = arith.truncf %75 : vector<16x16xf32> to vector<16x16xbf16>
    %c0_41 = arith.constant 0 : index
    %c0_42 = arith.constant 0 : index
    %77 = vector.load %arg10[%c0_41, %c0_42] : memref<16x144xbf16, #tpu.memory_space<vmem>>, vector<16x144xbf16>
    %cst_43 = arith.constant dense<0.000000e+00> : vector<16x144xf32>
    %78 = tpu.matmul %76, %77, %cst_43 {dimension_numbers = #tpu.dot_dimension_numbers<[1], [0], [0], [1], [0, 0, 1, 1], [], []>} : vector<16x16xbf16>, vector<16x144xbf16>, vector<16x144xf32> -> vector<16x144xf32>
    %c0_44 = arith.constant 0 : index
    %c0_45 = arith.constant 0 : index
    %79 = vector.load %arg11[%c0_44, %c0_45] : memref<1x144xf32, #tpu.memory_space<vmem>>, vector<1x144xf32>
    %80 = vector.broadcast %79 : vector<1x144xf32> to vector<16x144xf32>
    %81 = arith.addf %78, %80 : vector<16x144xf32>
    %82 = vector.extract_strided_slice %81 {offsets = [0, 0], sizes = [16, 48], strides = [1, 1]} : vector<16x144xf32> to vector<16x48xf32>
    %83 = arith.negf %82 : vector<16x48xf32>
    %84 = math.exp %83 : vector<16x48xf32>
    %cst_46 = arith.constant 1.000000e+00 : f32
    %85 = vector.broadcast %cst_46 : f32 to vector<16x48xf32>
    %86 = arith.addf %85, %84 : vector<16x48xf32>
    %87 = arith.divf %85, %86 : vector<16x48xf32>
    %88 = vector.extract_strided_slice %81 {offsets = [0, 48], sizes = [16, 48], strides = [1, 1]} : vector<16x144xf32> to vector<16x48xf32>
    %cst_47 = arith.constant 0.000000e+00 : f32
    %89 = vector.broadcast %cst_47 : f32 to vector<16x48xf32>
    %90 = arith.maximumf %88, %89 : vector<16x48xf32>
    %91 = vector.broadcast %cst_47 : f32 to vector<16x48xf32>
    %92 = arith.subf %88, %91 : vector<16x48xf32>
    %93 = arith.cmpf one, %92, %92 : vector<16x48xf32>
    %94 = vector.broadcast %cst_47 : f32 to vector<16x48xf32>
    %95 = arith.addf %88, %94 : vector<16x48xf32>
    %96 = math.absf %92 : vector<16x48xf32>
    %cst_48 = arith.constant 0.000000e+00 : f32
    %97 = vector.broadcast %cst_48 : f32 to vector<16x48xf32>
    %98 = arith.subf %97, %96 : vector<16x48xf32>
    %99 = math.exp %98 : vector<16x48xf32>
    %100 = math.log1p %99 : vector<16x48xf32>
    %101 = arith.addf %90, %100 : vector<16x48xf32>
    %102 = arith.select %93, %95, %101 : vector<16x48xi1>, vector<16x48xf32>
    %cst_49 = arith.constant 9.99999974E-5 : f32
    %cst_50 = arith.constant 1.000000e+04 : f32
    %103 = vector.broadcast %cst_49 : f32 to vector<16x48xf32>
    %104 = arith.maximumf %103, %102 : vector<16x48xf32>
    %105 = vector.broadcast %cst_50 : f32 to vector<16x48xf32>
    %106 = arith.minimumf %105, %104 : vector<16x48xf32>
    %107 = vector.extract_strided_slice %81 {offsets = [0, 96], sizes = [16, 48], strides = [1, 1]} : vector<16x144xf32> to vector<16x48xf32>
    %108 = math.exp %107 : vector<16x48xf32>
    %cst_51 = arith.constant 9.99999974E-6 : f32
    %cst_52 = arith.constant 1.000000e+06 : f32
    %109 = vector.broadcast %cst_51 : f32 to vector<16x48xf32>
    %110 = arith.maximumf %109, %108 : vector<16x48xf32>
    %111 = vector.broadcast %cst_52 : f32 to vector<16x48xf32>
    %112 = arith.minimumf %111, %110 : vector<16x48xf32>
    %c0_53 = arith.constant 0 : index
    %c0_54 = arith.constant 0 : index
    %113 = vector.load %arg12[%c0_53, %c0_54] : memref<16x192xf32, #tpu.memory_space<vmem>>, vector<16x16xf32>
    tpu.vector_store %arg12[%c0_53, %c0_54], %75 {strides = array<i32>} : memref<16x192xf32, #tpu.memory_space<vmem>>, vector<16x16xf32>,
    %c0_55 = arith.constant 0 : index
    %c16 = arith.constant 16 : index
    %114 = vector.load %arg12[%c0_55, %c16] : memref<16x192xf32, #tpu.memory_space<vmem>>, vector<16x32xf32>
    tpu.vector_store %arg12[%c0_55, %c16], %61 {strides = array<i32>} : memref<16x192xf32, #tpu.memory_space<vmem>>, vector<16x32xf32>,
    %c0_56 = arith.constant 0 : index
    %c48 = arith.constant 48 : index
    %115 = vector.load %arg12[%c0_56, %c48] : memref<16x192xf32, #tpu.memory_space<vmem>>, vector<16x48xf32>
    tpu.vector_store %arg12[%c0_56, %c48], %87 {strides = array<i32>} : memref<16x192xf32, #tpu.memory_space<vmem>>, vector<16x48xf32>,
    %c0_57 = arith.constant 0 : index
    %c96 = arith.constant 96 : index
    %116 = vector.load %arg12[%c0_57, %c96] : memref<16x192xf32, #tpu.memory_space<vmem>>, vector<16x48xf32>
    tpu.vector_store %arg12[%c0_57, %c96], %106 {strides = array<i32>} : memref<16x192xf32, #tpu.memory_space<vmem>>, vector<16x48xf32>,
    %c0_58 = arith.constant 0 : index
    %c144 = arith.constant 144 : index
    %117 = vector.load %arg12[%c0_58, %c144] : memref<16x192xf32, #tpu.memory_space<vmem>>, vector<16x48xf32>
    tpu.vector_store %arg12[%c0_58, %c144], %112 {strides = array<i32>} : memref<16x192xf32, #tpu.memory_space<vmem>>, vector<16x48xf32>,
    return
  }
}

</mosaic_0001>

<bundles_post_ra>
// kernel: stmmr_forward.1
= control target key start
LH: loop header
LB: loop body
LE: loop exit
PB: predicated region body
PF: predicated region fallthrough
CT: control target
= control target key end

     0   :  { %v1112_v0 = vmov 0.0   ;;  %vm1113_vm0 = vmmov 0   ;;  %vm89_vm1 = vcmask 1043456   ;;  %vm85_vm2 = vcmask 588800   ;;  %s1114_s24 = smov 112   ;;  %s1115_s29 = smov 16   ;;  %s1389_s2 = inlined_call_operand.vmem [shape: bf16[72,64], index: 2, kind: input, shape index: {}]   ;;  %s1390_s0 = inlined_call_operand.vmem [shape: bf16[16,72], index: 0, kind: input, shape index: {}]   ;;  %s1391_s1 = inlined_call_operand.vmem [shape: bf16[16,16], index: 1, kind: input, shape index: {}]   ;;  %s1392_s4 = inlined_call_operand.vmem [shape: bf16[64,32], index: 4, kind: input, shape index: {}]   ;;  %s1393_s3 = inlined_call_operand.vmem [shape: f32[1,64], index: 3, kind: input, shape index: {}]   ;;  %s1394_s5 = inlined_call_operand.vmem [shape: f32[1,32], index: 5, kind: input, shape index: {}]   ;;  %s1395_s6 = inlined_call_operand.vmem [shape: bf16[32,32], index: 6, kind: input, shape index: {}]   ;;  %s1396_s7 = inlined_call_operand.vmem [shape: f32[1,32], index: 7, kind: input, shape index: {}]   ;;  %s1397_s8 = inlined_call_operand.vmem [shape: bf16[32,16], index: 8, kind: input, shape index: {}]   ;;  %s1398_s10 = inlined_call_operand.vmem [shape: bf16[16,144], index: 10, kind: input, shape index: {}]   ;;  %s1399_s9 = inlined_call_operand.vmem [shape: f32[1,16], index: 9, kind: input, shape index: {}]   ;;  %s1400_s12 = inlined_call_operand.vmem [shape: f32[16,192], index: 12, kind: output, shape index: {}]   ;;  %s1401_s11 = inlined_call_operand.vmem [shape: f32[1,144], index: 11, kind: input, shape index: {}]  }
   0x1   :  { %970 = vmatprep.subr.bf16.mxu0 %v1112_v0  ;;  %v1054_v1 = vld [vmem:[%s1389_s2] sm:$0xff]   ;;  %980 = vmatprep.mubr.msk.bf16.mxu0 %vm1113_vm0, %v1112_v0  ;;  %v1055_v2 = vld [vmem:[%s1389_s2 + $0x8] sm:$0xff]   ;;  %v1056_v3 = vld [vmem:[%s1389_s2 + $0x10] sm:$0xff]   ;;  %vm149_vm3 = vcmask 130048   ;;  %vm229_vm4 = vcmask 523264   ;;  %vm585_vm5 = vcmask 261120  }
   0x2   :  { %984 = vmatprep.subr.bf16.mxu1 %v1112_v0  ;;  %986 = vmatprep.mubr.msk.bf16.mxu1 %vm1113_vm0, %v1112_v0  ;;  %v1057_v4 = vld [vmem:[%s1389_s2 + $0x18] sm:$0xff]   ;;  %v1058_v5 = vld [vmem:[%s1389_s2 + $0x20] ss:$0 sps:$4 sm:$0xff]   ;;  %v1062_v15 = vld [vmem:[%s1392_s4 + $0x8] sm:$0xff]   ;;  %vm856_vm6 = vcmask 392320   ;;  %vm867_vm11 = vcmask 785792  }
   0x3   :  { %971 = vmatpush3.bf16.msra.mxu0 %v1054_v1  ;;  %v91_v6 = vsel %vm89_vm1, %v1058_v5, 0  ;;  %v1059_v7 = vld [vmem:[%s1390_s0] sm:$0xff]   ;;  %v1063_v16 = vld [vmem:[%s1392_s4 + $0x10] sm:$0xff]   ;;  %v1064_v17 = vld [vmem:[%s1392_s4 + $0x18] sm:$0xff]   ;;  %vm895_vm12 = vcmask 392192   ;;  %vm878_vm13 = vcmask 1048320  }
   0x4   :  { %972 = vmatprep.subr.bf16.mxu0 %v1112_v0  ;;  %v1060_v13 = vld [vmem:[%s1391_s1] sm:$0xff]   ;;  %v1066_v49 = vld [vmem:[%s1395_s6 + $0x8] sm:$0xff]   ;;  %vm900_vm14 = vcmask 523392  }
   0x5   :  { %v1061_v14 = vld [vmem:[%s1392_s4] sm:$0xff]  }
   0x6   :  { %v914_v18 = vld [vmem:[%s1393_s3] ss:$0 sm:$0xff] }
   0x7   :  { %973 = vmatpush3.bf16.msra.mxu0 %v1055_v2  ;;  %v922_v33 = vld [vmem:[%s1394_s5] ss:$0 sm:$0xff] }
   0x8   :  { %974 = vmatprep.subr.bf16.mxu0 %v1112_v0  ;;  %v1065_v47 = vld [vmem:[%s1395_s6] sm:$0xff]  }
   0x9   :  { %v928_v62 = vld [vmem:[%s1396_s7] ss:$0 sm:$0xff] }
   0xb   :  { %975 = vmatpush3.bf16.msra.mxu0 %v1056_v3 }
   0xc   :  { %976 = vmatprep.subr.bf16.mxu0 %v1112_v0 }
   0xf   :  { %977 = vmatpush3.bf16.msra.mxu0 %v1057_v4 }
  0x10   :  { %978 = vmatprep.subr.bf16.mxu0 %v1112_v0 }
  0x13   :  { %979 = vmatpush3.bf16.msra.mxu0 %v91_v6 }
  0x14   :  { %1002 = vmatprep.subr.bf16.mxu0 %v1112_v0 }
  0x16   :  { %981 = vmatmul.mubr.msk.bf16.vlgmr.msra.gmra.mrb[0].mxu0 %vm85_vm2, %v1059_v7 }
  0x17   :  { %1004 = vmatprep.mubr.msk.bf16.mxu0 %vm1113_vm0, %v1112_v0 }
  0xe9   :  { %v127_v8 = vpop.f32.mrb[0].mxu0 }
  0xea   :  { %v982_v9 = vpop.f32.mrb[1].mxu0 }
  0xeb   :  { %v130_v10 = vpop.f32.mrb[2].mxu0 }
  0xec   :  { %v136_v11 = vpack.c.bf16 %v130_v10, %v127_v8  ;;  %v983_v12 = vpop.f32.mrb[3].mxu0 }
  0xee   :  { %985 = vmatpush3.bf16.msra.mxu1 %v136_v11 }
  0xef   :  { %990 = vmatprep.subr.bf16.mxu1 %v1112_v0 }
  0xf1   :  { %987 = vmatmul.mubr.msk.bf16.vlgmr.msra.gmra.mrb[0].mxu1 %vm149_vm3, %v1060_v13 }
  0xf2   :  { %991 = vmatpush3.bf16.msra.mxu1 %v1061_v14  ;;  %998 = vmatprep.mubr.msk.bf16.mxu1 %vm1113_vm0, %v1112_v0 }
  0xf3   :  { %992 = vmatprep.subr.bf16.mxu1 %v1112_v0 }
  0xf6   :  { %993 = vmatpush3.bf16.msra.mxu1 %v1062_v15 }
  0xf7   :  { %994 = vmatprep.subr.bf16.mxu1 %v1112_v0 }
  0xfa   :  { %995 = vmatpush3.bf16.msra.mxu1 %v1063_v16 }
  0xfb   :  { %996 = vmatprep.subr.bf16.mxu1 %v1112_v0 }
  0xfe   :  { %997 = vmatpush3.bf16.msra.mxu1 %v1064_v17 }
  0xff   :  { %1008 = vmatprep.subr.bf16.mxu1 %v1112_v0 }
 0x1c4   :  { %v187_v19 = vpop.f32.mrb[0].mxu1 }
 0x1c5   :  { %v188_v20 = vadd.f32 %v914_v18, %v187_v19  ;;  %v988_v21 = vpop.f32.mrb[1].mxu1 }
 0x1c6   :  { %v190_v22 = vpop.f32.mrb[2].mxu1 }
 0x1c7   :  { %v191_v23 = vadd.f32 %v914_v18, %v190_v22  ;;  %v989_v24 = vpop.f32.mrb[3].mxu1  ;;  %v194_v25 = vmax.f32 %v188_v20, 0.0 }
 0x1c9   :  { %v195_v26 = vmax.f32 %v191_v23, 0.0 }
 0x1cb   :  { %v196_v27 = vpack.c.bf16 %v195_v26, %v194_v25 }
 0x1cd   :  { %999 = vmatmul.mubr.msk.bf16.vlgmr.msra.gmra.mrb[4].mxu1 %vm229_vm4, %v196_v27 }
 0x1ce   :  { %1010 = vmatprep.mubr.msk.bf16.mxu1 %vm1113_vm0, %v1112_v0 }
 0x2a0   :  { %v267_v28 = vpop.f32.mrb[4].mxu1 }
 0x2a1   :  { %v1000_v29 = vpop.f32.mrb[5].mxu1 }
 0x2a2   :  { %v270_v30 = vpop.f32.mrb[6].mxu1 }
 0x2a3   :  { %v274_v31 = vpack.c.bf16 %v270_v30, %v267_v28  ;;  %v1001_v32 = vpop.f32.mrb[7].mxu1 }
 0x2a5   :  { %1003 = vmatpush3.bf16.msra.mxu0 %v274_v31 }
 0x2a6   :  { %1014 = vmatprep.subr.bf16.mxu0 %v1112_v0 }
 0x2a8   :  { %1005 = vmatmul.mubr.msk.bf16.vlgmr.msra.gmra.mrb[4].mxu0 %vm149_vm3, %v1060_v13 }
 0x2a9   :  { %1016 = vmatprep.mubr.msk.bf16.mxu0 %vm1113_vm0, %v1112_v0 }
 0x37b   :  { %v316_v34 = vpop.f32.mrb[4].mxu0 }
 0x37c   :  { %v317_v35 = vadd.f32 %v922_v33, %v316_v34  ;;  %v1006_v36 = vpop.f32.mrb[5].mxu0 }
 0x37d   :  { %v319_v37 = vpop.f32.mrb[6].mxu0 }
 0x37e   :  { %v320_v38 = vadd.f32 %v922_v33, %v319_v37  ;;  %v1007_v39 = vpop.f32.mrb[7].mxu0  ;;  %v323_v40 = vmul.f32 0.25, %v317_v35 }
 0x380   :  { %v324_v41 = vmul.f32 0.25, %v320_v38  ;;  %v326_v42 = vpack.c.bf16 %v320_v38, %v317_v35 }
 0x382   :  { %445 = vrot.lane.b32.xlu0 %v326_v42, %s1114_s24  ;;  %v331_v43 = vsel %vm149_vm3, %v326_v42, 0  ;;  %1015 = vmatpush3.bf16.msra.mxu0 %v326_v42  ;;  %v325_v44 = vpack.c.bf16 %v324_v41, %v323_v40  ;;  %v1067_v41 = vld [vmem:[%s1397_s8] sm:$0xff]  }
 0x383   :  { %1009 = vmatpush3.bf16.xpose.msra.mxu1 %v331_v43  ;;  %1026 = vmatprep.subr.bf16.mxu0 %v1112_v0  ;;  %v1068_v43 = vld [vmem:[%s1397_s8 + $0x8] sm:$0xff]  }
 0x384   :  { %1020 = vmatprep.subr.bf16.mxu1 %v1112_v0 }
 0x386   :  { %442 = vrot.lane.b32.xlu0 %v325_v44, %s1114_s24 }
 0x38a   :  { %1011 = vmatmul.mubr.msk.bf16.vlgmr.msra.gmra.mrb[8].mxu1 %vm149_vm3, %v325_v44 }
 0x38b   :  { %1022 = vmatprep.mubr.msk.bf16.mxu1 %vm1113_vm0, %v1112_v0 }
 0x3f4   :  { %v1255_v45 = vpop.permute.xlu0 %445 }
 0x3f5   :  { %v451_v46 = vsel %vm149_vm3, %v1255_v45, 0 }
 0x3f6   :  { %1021 = vmatpush3.bf16.xpose.msra.mxu1 %v451_v46 }
 0x3f7   :  { %1032 = vmatprep.subr.bf16.mxu1 %v1112_v0 }
 0x3f8   :  { %v443_v48 = vpop.permute.xlu0 %442 }
 0x3fd   :  { %1023 = vmatmul.mubr.msk.bf16.vlgmr.msra.gmra.mrb[12].mxu1 %vm149_vm3, %v443_v48 }
 0x3fe   :  { %1033 = vmatpush3.bf16.msra.mxu1 %v1065_v47  ;;  %1036 = vmatprep.mubr.msk.bf16.mxu1 %vm1113_vm0, %v1112_v0  ;;  %v1071_v47 = vld [vmem:[%s1398_s10 + $0x4] ss:$8 sps:$4 sm:$0xff]  }
 0x3ff   :  { %1034 = vmatprep.subr.bf16.mxu1 %v1112_v0 }
 0x402   :  { %1035 = vmatpush3.bf16.msra.mxu1 %v1066_v49  ;;  %v1069_v49 = vld [vmem:[%s1398_s10] ss:$8 sps:$4 sm:$0xff]  }
 0x403   :  { %735 = vmatprep.subr.bf16.mxu1 %v1071_v47 }
 0x405   :  { %1037 = vmatmul.mubr.msk.bf16.vlgmr.msra.gmra.mrb[16].mxu1 %vm585_vm5, %v326_v42 }
 0x406   :  { %736 = vmatpush1.bf16.msra.mxu1 %v1069_v49 }
 0x45d   :  { %v367_v50 = vpop.f32.mrb[8].mxu1 }
 0x45e   :  { %v1012_v51 = vpop.f32.mrb[9].mxu1  ;;  %v374_v52 = vsel %vm149_vm3, %v367_v50, -inf }
 0x45f   :  { %375 = vmax.xlane.f32.xlu1 %v374_v52  ;;  %v370_v53 = vpop.f32.mrb[10].mxu1 }
 0x460   :  { %v1013_v54 = vpop.f32.mrb[11].mxu1  ;;  %v377_v55 = vsel %vm149_vm3, %v370_v53, -inf }
 0x463   :  { %378 = vmax.xlane.f32.xlu1 %v377_v55 }
 0x4d0   :  { %v487_v56 = vpop.f32.mrb[12].mxu1 }
 0x4d1   :  { %v1024_v57 = vpop.f32.mrb[13].mxu1  ;;  %v494_v58 = vsel %vm149_vm3, %v487_v56, -inf }
 0x4d2   :  { %495 = vmax.xlane.f32.xlu0 %v494_v58  ;;  %v490_v59 = vpop.f32.mrb[14].mxu1 }
 0x4d3   :  { %v1025_v60 = vpop.f32.mrb[15].mxu1  ;;  %v497_v61 = vsel %vm149_vm3, %v490_v59, -inf }
 0x4d4   :  { %498 = vmax.xlane.f32.xlu1 %v497_v61 }
 0x4d8   :  { %v622_v63 = vpop.f32.mrb[16].mxu1 }
 0x4d9   :  { %v1278_v1 = vadd.f32 %v928_v62, %v622_v63  ;;  %v1038_v2 = vpop.f32.mrb[17].mxu1 }
 0x4da   :  { %v625_v3 = vpop.f32.mrb[18].mxu1 }
 0x4db   :  { %v1039_v4 = vpop.f32.mrb[19].mxu1  ;;  %v1280_v5 = vadd.f32 %v928_v62, %v625_v3  ;;  %v629_v27 = vmax.f32 %v1278_v1, 0.0 }
 0x4dd   :  { %v630_v6 = vmax.f32 %v1280_v5, 0.0 }
 0x4df   :  { %v631_v44 = vpack.c.bf16 %v630_v6, %v629_v27 }
 0x4e8   :  { %852 = vrot.lane.b32.xlu0 %v630_v6, %s1115_s29 }
 0x4ec   :  { %v376_v7 = vpop.xlane.xlu1 %375 }
 0x4ed   :  { %v380_v8 = vsub.f32 %v367_v50, %v376_v7 }
 0x4ef   :  { %v382_v9 = vmul.f32 1.442695, %v380_v8 }
 0x4f0   :  { %v379_v10 = vpop.xlane.xlu1 %378 }
 0x4f1   :  { %1072 = vpow2.f32 %v382_v9  ;;  %v381_v11 = vsub.f32 %v370_v53, %v379_v10  ;;  %v712_v10 = vlaneseq }
 0x4f3   :  { %v384_v12 = vmul.f32 1.442695, %v381_v11  ;;  %v713_v11 = vshrl.u32 %v712_v10, 7 }
 0x4f5   :  { %1074 = vpow2.f32 %v384_v12  ;;  %v714_v12 = vsub.s32 0, %v713_v11 }
 0x4fb   :  { %v1073_v13 = vpop.eup %1072 }
 0x4fc   :  { %v386_v14 = vsel %vm149_vm3, %v1073_v13, 0.0 }
 0x4fd   :  { %387 = vadd.xlane.f32.xlu1 %v386_v14  ;;  %v718_v14 = vsub.s32 1, %v713_v11 }
 0x4ff   :  { %v1075_v15 = vpop.eup %1074 }
 0x500   :  { %v389_v16 = vsel %vm149_vm3, %v1075_v15, 0.0 }
 0x501   :  { %390 = vadd.xlane.f32.xlu1 %v389_v16 }
 0x55f   :  { %v496_v17 = vpop.xlane.xlu0 %495 }
 0x560   :  { %v500_v18 = vsub.f32 %v487_v56, %v496_v17 }
 0x561   :  { %v499_v19 = vpop.xlane.xlu1 %498 }
 0x562   :  { %v502_v20 = vmul.f32 1.442695, %v500_v18  ;;  %v501_v21 = vsub.f32 %v490_v59, %v499_v19  ;;  %v932_v59 = vld [vmem:[%s1399_s9] ss:$0 sm:$0xff] }
 0x563   :  { %v853_v8 = vpop.permute.xlu0 %852 }
 0x564   :  { %1076 = vpow2.f32 %v502_v20  ;;  %v504_v22 = vmul.f32 1.442695, %v501_v21 }
 0x566   :  { %1078 = vpow2.f32 %v504_v22 }
 0x56e   :  { %v1077_v23 = vpop.eup %1076 }
 0x56f   :  { %v506_v24 = vsel %vm149_vm3, %v1077_v23, 0.0 }
 0x570   :  { %v1079_v25 = vpop.eup %1078  ;;  %507 = vadd.xlane.f32.xlu1 %v506_v24 }
 0x571   :  { %v509_v26 = vsel %vm149_vm3, %v1079_v25, 0.0 }
 0x574   :  { %510 = vadd.xlane.f32.xlu1 %v509_v26 }
 0x585   :  { %850 = vrot.lane.b32.xlu1 %v629_v27, %s1115_s29 }
 0x58a   :  { %v388_v28 = vpop.xlane.xlu1 %387 }
 0x58b   :  { %1080 = vrcp.f32 %v388_v28 }
 0x58e   :  { %v391_v29 = vpop.xlane.xlu1 %390 }
 0x58f   :  { %1082 = vrcp.f32 %v391_v29 }
 0x595   :  { %v1081_v30 = vpop.eup %1080 }
 0x596   :  { %v393_v32 = vmul.f32 %v1081_v30, %v1073_v13  ;;  %v710_v13 = vld [vmem:[%s1401_s11] sm:$0x3]  ;;  %s1117_s11 = smov 48  }
 0x597   :  { %v719_v16 = vrot.slane %v710_v13, %v718_v14 }
 0x599   :  { %v1083_v31 = vpop.eup %1082 }
 0x59a   :  { %v395_v33 = vmul.f32 %v1083_v31, %v1075_v15  ;;  %v715_v15 = vrot.slane %v710_v13, %v714_v12 }
 0x59c   :  { %v396_v34 = vpack.c.bf16 %v395_v33, %v393_v32 }
 0x59e   :  { %1017 = vmatmul.mubr.msk.bf16.vlgmr.msra.gmra.mrb[8].mxu0 %vm149_vm3, %v396_v34 }
 0x59f   :  { %1027 = vmatpush3.bf16.msra.mxu0 %v1255_v45  ;;  %1028 = vmatprep.mubr.msk.bf16.mxu0 %vm1113_vm0, %v1112_v0 }
 0x5a0   :  { %1040 = vmatprep.subr.bf16.mxu0 %v1112_v0 }
 0x5fd   :  { %v508_v35 = vpop.xlane.xlu1 %507 }
 0x5fe   :  { %1084 = vrcp.f32 %v508_v35 }
 0x601   :  { %v511_v36 = vpop.xlane.xlu1 %510 }
 0x602   :  { %1086 = vrcp.f32 %v511_v36 }
 0x605   :  { %v851_v6 = vpop.permute.xlu1 %850 }
 0x608   :  { %v1085_v37 = vpop.eup %1084 }
 0x609   :  { %v513_v39 = vmul.f32 %v1085_v37, %v1077_v23 }
 0x60c   :  { %v1087_v38 = vpop.eup %1086 }
 0x60d   :  { %v515_v40 = vmul.f32 %v1087_v38, %v1079_v25 }
 0x60f   :  { %v516_v42 = vpack.c.bf16 %v515_v40, %v513_v39 }
 0x611   :  { %1029 = vmatmul.mubr.msk.bf16.vlgmr.msra.gmra.mrb[12].mxu0 %vm149_vm3, %v516_v42 }
 0x612   :  { %1041 = vmatpush3.bf16.msra.mxu0 %v1067_v41  ;;  %1044 = vmatprep.mubr.msk.bf16.mxu0 %vm1113_vm0, %v1112_v0 }
 0x613   :  { %1042 = vmatprep.subr.bf16.mxu0 %v1112_v0  ;;  %v1116_v0 = vmov 0  }
 0x614   :  { %767 = vmatprep.mubr.bf16.mxu1 %v1116_v0 }
 0x616   :  { %1043 = vmatpush3.bf16.msra.mxu0 %v1068_v43 }
 0x619   :  { %1045 = vmatmul.mubr.msk.bf16.vlgmr.msra.gmra.mrb[16].mxu0 %vm585_vm5, %v631_v44 }
 0x671   :  { %v434_v45 = vpop.f32.mrb[8].mxu0 }
 0x672   :  { %v1018_v46 = vpop.f32.mrb[9].mxu0  ;;  %v699_v51 = vmul.f32 20.0, %v434_v45 }
 0x673   :  { %v437_v48 = vpop.f32.mrb[10].mxu0 }
 0x674   :  { %v1019_v50 = vpop.f32.mrb[11].mxu0  ;;  %v700_v53 = vmul.f32 20.0, %v437_v48 }
 0x6e4   :  { %v555_v52 = vpop.f32.mrb[12].mxu0 }
 0x6e5   :  { %v701_v54 = vadd.f32 %v699_v51, %v555_v52  ;;  %v1030_v55 = vpop.f32.mrb[13].mxu0 }
 0x6e6   :  { %v558_v56 = vpop.f32.mrb[14].mxu0 }
 0x6e7   :  { %v702_v57 = vadd.f32 %v700_v53, %v558_v56  ;;  %v1031_v58 = vpop.f32.mrb[15].mxu0 }
 0x6ec   :  { %v692_v60 = vpop.f32.mrb[16].mxu0 }
 0x6ed   :  { %v693_v61 = vadd.f32 %v932_v59, %v692_v60  ;;  %v1046_v62 = vpop.f32.mrb[17].mxu0 }
 0x6ee   :  { %v695_v63 = vpop.f32.mrb[18].mxu0 }
 0x6ef   :  { %v703_v1 = vmul.f32 10.0, %v693_v61  ;;  %v696_v2 = vadd.f32 %v932_v59, %v695_v63  ;;  %v1047_v3 = vpop.f32.mrb[19].mxu0 }
 0x6f1   :  { %v705_v4 = vadd.f32 %v703_v1, %v701_v54  ;;  %v704_v5 = vmul.f32 10.0, %v696_v2 }
 0x6f3   :  { %846 = vst.msk [vmem:[%s1400_s12] sm:$0xff] %vm149_vm3, %v705_v4  ;;  %v706_v7 = vadd.f32 %v704_v5, %v702_v57 }
 0x6f4   :  { %857 = vst.msk [vmem:[%s1400_s12] sm:$0xff] %vm856_vm6, %v851_v6 }
 0x6f5   :  { %v707_v9 = vpack.c.bf16 %v706_v7, %v705_v4  ;;  %847 = vst.msk [vmem:[%s1400_s12 + $0x10] sm:$0xff] %vm149_vm3, %v706_v7 }
 0x6f6   :  { %858 = vst.msk [vmem:[%s1400_s12 + $0x10] sm:$0xff] %vm856_vm6, %v853_v8 }
 0x6f7   :  { %938 = vmatmul.mubr.msk.bf16.vlgmr.msra.gmra.mrb[20].mxu1 %vm149_vm3, %v707_v9 }
 0x7ca   :  { %v769_v17 = vpop.f32.mrb[20].mxu1 }
 0x7cb   :  { %v1337_v18 = vadd.f32 %v769_v17, %v715_v15  ;;  %v771_v19 = vpop.f32.mrb[21].mxu1 }
 0x7cc   :  { %v772_v20 = vadd.f32 %v771_v19, %v719_v16  ;;  %v773_v21 = vpop.f32.mrb[22].mxu1 }
 0x7cd   :  { %v939_v22 = vmul.f32 -1.442695, %v1337_v18  ;;  %v796_v23 = vand.u32 2147483647, %v1337_v18  ;;  %v1341_v24 = vadd.f32 %v773_v21, %v715_v15  ;;  %v775_v25 = vpop.f32.mrb[23].mxu1  ;;  %v790_v2 = vmax.f32 %v1337_v18, 0.0 }
 0x7ce   :  { %v832_v26 = vmul.f32 1.442695, %v772_v20  ;;  %v830_v30 = vmul.f32 1.442695, %v1337_v18  ;;  %v776_v0 = vadd.f32 %v775_v25, %v719_v16  ;;  %vm792_vm9 = vcmp.ne.f32.partialorder %v1337_v18, %v1337_v18 }
 0x7cf   :  { %1088 = vpow2.f32 %v939_v22  ;;  %v798_v27 = vsub.f32 0.0, %v796_v23  ;;  %v940_v28 = vmul.f32 -1.442695, %v1341_v24  ;;  %v797_v29 = vand.u32 2147483647, %v1341_v24 }
 0x7d0   :  { %1090 = vpow2.f32 %v832_v26  ;;  %v834_v33 = vmul.f32 1.442695, %v1341_v24  ;;  %v836_v55 = vmul.f32 1.442695, %v776_v0  ;;  %v791_v7 = vmax.f32 %v1341_v24, 0.0 }
 0x7d1   :  { %v800_v31 = vmul.f32 1.442695, %v798_v27  ;;  %1092 = vpow2.f32 %v940_v28  ;;  %v799_v32 = vsub.f32 0.0, %v797_v29  ;;  %vm793_vm10 = vcmp.ne.f32.partialorder %v1341_v24, %v1341_v24 }
 0x7d3   :  { %1094 = vpow2.f32 %v800_v31  ;;  %v802_v34 = vmul.f32 1.442695, %v799_v32 }
 0x7d4   :  { %1096 = vpow2.f32 %v830_v30 }
 0x7d5   :  { %1098 = vpow2.f32 %v802_v34 }
 0x7d6   :  { %1100 = vpow2.f32 %v834_v33 }
 0x7d9   :  { %v1089_v35 = vpop.eup %1088 }
 0x7da   :  { %v1091_v36 = vpop.eup %1090  ;;  %v784_v37 = vadd.f32 1.0, %v1089_v35 }
 0x7db   :  { %v1093_v38 = vpop.eup %1092  ;;  %v839_v39 = vmax.f32 %v1091_v36, 1e-05 }
 0x7dc   :  { %1102 = vrcp.f32 %v784_v37  ;;  %v785_v40 = vadd.f32 1.0, %v1093_v38 }
 0x7dd   :  { %v1095_v41 = vpop.eup %1094  ;;  %v843_v42 = vmin.f32 %v839_v39, 1000000.0 }
 0x7de   :  { %v1097_v43 = vpop.eup %1096  ;;  %v804_v44 = vadd.f32 1.0, %v1095_v41  ;;  %1104 = vrcp.f32 %v785_v40  ;;  %v807_v51 = vmul.f32 -0.5, %v1095_v41  ;;  %v810_v57 = vand.u32 2147483647, %v1095_v41 }
 0x7df   :  { %v1099_v45 = vpop.eup %1098  ;;  %v838_v46 = vmax.f32 %v1097_v43, 1e-05  ;;  %889 = vrot.lane.b32.xlu1 %v843_v42, %s1117_s11 }
 0x7e0   :  { %v1101_v47 = vpop.eup %1100  ;;  %1106 = vlog2.f32 %v804_v44  ;;  %v813_v48 = vadd.f32 1.0, %v1099_v45  ;;  %v816_v53 = vmul.f32 -0.5, %v1099_v45  ;;  %v808_v56 = vadd.f32 1.0, %v807_v51 }
 0x7e1   :  { %v842_v49 = vmin.f32 %v838_v46, 1000000.0  ;;  %v840_v50 = vmax.f32 %v1101_v47, 1e-05  ;;  %v819_v61 = vand.u32 2147483647, %v1099_v45 }
 0x7e2   :  { %1108 = vlog2.f32 %v813_v48  ;;  %v817_v59 = vadd.f32 1.0, %v816_v53  ;;  %v809_v63 = vmul.f32 %v1095_v41, %v808_v56  ;;  %vm811_vm7 = vcmp.lt.f32.partialorder %v810_v57, 0.0004427343 }
 0x7e3   :  { %887 = vrot.lane.b32.xlu0 %v842_v49, %s1117_s11  ;;  %v844_v52 = vmin.f32 %v840_v50, 1000000.0  ;;  %1110 = vpow2.f32 %v836_v55  ;;  %vm820_vm8 = vcmp.lt.f32.partialorder %v819_v61, 0.0004427343 }
 0x7e4   :  { %v818_v5 = vmul.f32 %v1099_v45, %v817_v59 }
 0x7e6   :  { %v1103_v54 = vpop.eup %1102 }
 0x7e7   :  { %891 = vrot.lane.b32.xlu0 %v844_v52, %s1117_s11  ;;  %861 = vrot.lane.b32.xlu1 %v1103_v54, %s1117_s11 }
 0x7e8   :  { %v1105_v58 = vpop.eup %1104 }
 0x7ea   :  { %v1107_v60 = vpop.eup %1106 }
 0x7eb   :  { %863 = vrot.lane.b32.xlu1 %v1105_v58, %s1117_s11  ;;  %v806_v62 = vmul.f32 0.6931472, %v1107_v60 }
 0x7ec   :  { %v1109_v1 = vpop.eup %1108 }
 0x7ed   :  { %v812_v3 = vsel %vm811_vm7, %v809_v63, %v806_v62  ;;  %v815_v4 = vmul.f32 0.6931472, %v1109_v1  ;;  %v1111_v15 = vpop.eup %1110 }
 0x7ee   :  { %v822_v6 = vadd.f32 %v812_v3, %v790_v2  ;;  %v841_v16 = vmax.f32 %v1111_v15, 1e-05 }
 0x7ef   :  { %v821_v8 = vsel %vm820_vm8, %v818_v5, %v815_v4 }
 0x7f0   :  { %v824_v9 = vsel %vm792_vm9, %v1337_v18, %v822_v6  ;;  %v823_v10 = vadd.f32 %v821_v8, %v791_v7  ;;  %v845_v19 = vmin.f32 %v841_v16, 1000000.0 }
 0x7f1   :  { %v826_v11 = vmax.f32 %v824_v9, 0.0001 }
 0x7f2   :  { %v825_v12 = vsel %vm793_vm10, %v1341_v24, %v823_v10 }
 0x7f3   :  { %v828_v13 = vmin.f32 %v826_v11, 10000.0  ;;  %v827_v14 = vmax.f32 %v825_v12, 0.0001 }
 0x7f5   :  { %872 = vrot.lane.b32.xlu1 %v828_v13, %s1117_s11  ;;  %v829_v17 = vmin.f32 %v827_v14, 10000.0 }
 0x7f9   :  { %874 = vrot.lane.b32.xlu1 %v829_v17, %s1117_s11 }
 0x7fd   :  { %893 = vrot.lane.b32.xlu1 %v845_v19, %s1117_s11 }
 0x851   :  { %v890_v18 = vpop.permute.xlu1 %889 }
 0x855   :  { %v888_v22 = vpop.permute.xlu0 %887 }
 0x856   :  { %v896_v24 = vsel %vm895_vm12, %v888_v22, %v890_v18 }
 0x859   :  { %v862_v20 = vpop.permute.xlu1 %861  ;;  %v892_v26 = vpop.permute.xlu0 %891 }
 0x85a   :  { %868 = vst.msk [vmem:[%s1400_s12] sm:$0xff] %vm867_vm11, %v862_v20 }
 0x85d   :  { %v864_v21 = vpop.permute.xlu1 %863 }
 0x85e   :  { %869 = vst.msk [vmem:[%s1400_s12 + $0x10] sm:$0xff] %vm867_vm11, %v864_v21 }
 0x867   :  { %v873_v23 = vpop.permute.xlu1 %872 }
 0x868   :  { %879 = vst.msk [vmem:[%s1400_s12] sm:$0xff] %vm878_vm13, %v873_v23 }
 0x869   :  { %880 = vst.msk [vmem:[%s1400_s12 + $0x8] sm:$0xff] %vm149_vm3, %v873_v23 }
 0x86a   :  { %901 = vst.msk [vmem:[%s1400_s12 + $0x8] sm:$0xff] %vm900_vm14, %v896_v24 }
 0x86b   :  { %v875_v25 = vpop.permute.xlu1 %874 }
 0x86c   :  { %881 = vst.msk [vmem:[%s1400_s12 + $0x10] sm:$0xff] %vm878_vm13, %v875_v25 }
 0x86d   :  { %882 = vst.msk [vmem:[%s1400_s12 + $0x18] sm:$0xff] %vm149_vm3, %v875_v25 }
 0x86f   :  { %v894_v27 = vpop.permute.xlu1 %893 }
 0x870   :  { %v897_v28 = vsel %vm895_vm12, %v892_v26, %v894_v27 }
 0x871   :  { %902 = vst.msk [vmem:[%s1400_s12 + $0x18] sm:$0xff] %vm900_vm14, %v897_v28 }

</bundles_post_ra>
